<compile_context>
chip_gen: v7x
topology: tpu7x:2x2x1
jax: 0.10.0
libtpu: 0.0.40
codegen_flags: <defaults>
</compile_context>

<pallas_src>
import jax
import jax.numpy as jnp
from jax.experimental import pallas as pl
from jax.experimental.pallas import tpu as pltpu

_LANE = 128


def _rgb2ycbcr_kernel(x_ref, o_ref):
    # x_ref / o_ref: (bn, 3, tr, 128) blocks in VMEM.
    # Read each channel slab directly (whole-tile loads), compute in f32,
    # and store each output channel as soon as it is ready (whole-tile,
    # unmasked vst on the lane-dense minor dims).
    r = x_ref[:, 0].astype(jnp.float32)
    g = x_ref[:, 1].astype(jnp.float32)
    b = x_ref[:, 2].astype(jnp.float32)

    y = 0.299 * r + 0.587 * g + 0.114 * b                  # bias 0.0 skipped
    o_ref[:, 0] = y.astype(o_ref.dtype)

    cb = -0.169 * r - 0.331 * g + 0.5 * b + 0.5
    o_ref[:, 1] = cb.astype(o_ref.dtype)

    cr = 0.5 * r - 0.419 * g - 0.081 * b + 0.5
    o_ref[:, 2] = cr.astype(o_ref.dtype)


def rgb_to_ycbcr(im, *, max_rows_per_block=1024, max_group_bytes=6 * 1024 * 1024):
    """im: (N, 3, H, W) float32/bfloat16 -> (N, 3, H, W) YCbCr (same dtype)."""
    n, c, h, w = im.shape
    assert c == 3
    p = h * w

    # Flatten spatial dims and make the last axis lane-dense (width 128).
    rows = pl.cdiv(p, _LANE)
    p_pad = rows * _LANE

    x = im.reshape(n, 3, p)
    if p_pad != p:
        # TODO(synk): for non-128-aligned H*W, handle the <128-element ragged
        # tail with a masked store / tiny second pallas_call instead of a
        # full-tensor pad + slice (each of which re-streams HBM once).
        x = jnp.pad(x, ((0, 0), (0, 0), (0, p_pad - p)))
    x = x.reshape(n, 3, rows, _LANE)

    # --- tile / grouping selection -------------------------------------
    # tr: rows per spatial block.  Full-extent when small (no divisibility
    # constraint); otherwise 1024 (multiple of 8, ~1.5 MiB f32 per image).
    tr = rows if rows <= max_rows_per_block else max_rows_per_block

    itemsize = im.dtype.itemsize
    bytes_per_image_block = 3 * tr * _LANE * itemsize
    # Group batch elements purely by byte budget; ragged last batch block is
    # masked by Pallas (leading dim), so no divisor requirement.
    bn = max(1, min(n, max_group_bytes // bytes_per_image_block))

    grid_b = pl.cdiv(n, bn)
    grid_r = pl.cdiv(rows, tr)

    # v7x has 2 TensorCores; make sure the parallel grid has >= 2 points.
    if grid_b * grid_r == 1:
        if n > 1:
            bn = pl.cdiv(n, 2)
            grid_b = pl.cdiv(n, bn)
        elif rows >= 16:
            tr = max(8, ((pl.cdiv(rows, 2) + 7) // 8) * 8)
            grid_r = pl.cdiv(rows, tr)

    # Explicit scoped-VMEM budget: in + out blocks, double-buffered, + margin.
    block_bytes = bn * 3 * tr * _LANE * itemsize
    vmem_limit = int(min(max(4 * block_bytes + (4 << 20), 16 << 20), 60 << 20))

    spec = pl.BlockSpec((bn, 3, tr, _LANE), lambda i, j: (i, 0, j, 0))

    out = pl.pallas_call(
        _rgb2ycbcr_kernel,
        out_shape=jax.ShapeDtypeStruct((n, 3, rows, _LANE), im.dtype),
        grid=(grid_b, grid_r),
        in_specs=[spec],
        out_specs=spec,
        compiler_params=pltpu.CompilerParams(
            dimension_semantics=("parallel", "parallel"),
            vmem_limit_bytes=vmem_limit),
    )(x)

    out = out.reshape(n, 3, p_pad)
    if p_pad != p:
        out = out[:, :, :p]
    return out.reshape(n, 3, h, w)


def _reference(im):
    # Pure-JAX mirror of the PyTorch forward for verification.
    n, c, h, w = im.shape
    m = jnp.array([[0.299, 0.587, 0.114],
                   [-0.169, -0.331, 0.5],
                   [0.5, -0.419, -0.081]], dtype=jnp.float32)
    bias = jnp.array([0.0, 0.5, 0.5], dtype=jnp.float32)
    weight = m.T                                   # torch: tensor(...).transpose(0, 1)
    temp = jnp.transpose(im, (0, 2, 3, 1)).reshape(-1, 3)
    res = temp @ weight + bias[None, :]
    return jnp.transpose(res.reshape(n, h, w, 3), (0, 3, 1, 2)).astype(im.dtype)


if __name__ == "__main__":
    key = jax.random.PRNGKey(0)
    x = jax.random.uniform(key, (2, 3, 16, 16), dtype=jnp.float32)

    out = jax.block_until_ready(rgb_to_ycbcr(x))
    ref = _reference(x)

    assert out.shape == (2, 3, 16, 16)
    assert out.dtype == jnp.float32
    assert jnp.allclose(out, ref, atol=1e-5, rtol=1e-5)

    print("KERNEL_OK")
</pallas_src>

<mosaic_0001>
module attributes {stable_mosaic.version = 11 : i64} {
  func.func @_rgb2ycbcr_kernel(%arg0: i32, %arg1: i32, %arg2: memref<1x3x2x128xf32, #tpu.memory_space<vmem>>, %arg3: memref<1x3x2x128xf32, #tpu.memory_space<vmem>>) attributes {dimension_semantics = [#tpu.dimension_semantics<parallel>, #tpu.dimension_semantics<parallel>], iteration_bounds = array<i64: 2, 1>, scalar_prefetch = 0 : i64, scratch_operands = 0 : i64, tpu.core_type = #tpu.core_type<tc>, window_params = [{transform_indices = @transform_0, window_bounds = array<i64: 1, 3, 2, 128>}, {transform_indices = @transform_1, window_bounds = array<i64: 1, 3, 2, 128>}]} {
    %c0 = arith.constant 0 : index
    %c0_0 = arith.constant 0 : index
    %c0_1 = arith.constant 0 : index
    %c0_2 = arith.constant 0 : index
    %0 = vector.load %arg2[%c0, %c0_0, %c0_1, %c0_2] : memref<1x3x2x128xf32, #tpu.memory_space<vmem>>, vector<1x1x2x128xf32>
    %1 = vector.shape_cast %0 : vector<1x1x2x128xf32> to vector<1x2x128xf32>
    %c0_3 = arith.constant 0 : index
    %c1 = arith.constant 1 : index
    %c0_4 = arith.constant 0 : index
    %c0_5 = arith.constant 0 : index
    %2 = vector.load %arg2[%c0_3, %c1, %c0_4, %c0_5] : memref<1x3x2x128xf32, #tpu.memory_space<vmem>>, vector<1x1x2x128xf32>
    %3 = vector.shape_cast %2 : vector<1x1x2x128xf32> to vector<1x2x128xf32>
    %c0_6 = arith.constant 0 : index
    %c2 = arith.constant 2 : index
    %c0_7 = arith.constant 0 : index
    %c0_8 = arith.constant 0 : index
    %4 = vector.load %arg2[%c0_6, %c2, %c0_7, %c0_8] : memref<1x3x2x128xf32, #tpu.memory_space<vmem>>, vector<1x1x2x128xf32>
    %5 = vector.shape_cast %4 : vector<1x1x2x128xf32> to vector<1x2x128xf32>
    %cst = arith.constant 2.990000e-01 : f32
    %6 = vector.broadcast %cst : f32 to vector<1x2x128xf32>
    %7 = arith.mulf %6, %1 : vector<1x2x128xf32>
    %cst_9 = arith.constant 5.870000e-01 : f32
    %8 = vector.broadcast %cst_9 : f32 to vector<1x2x128xf32>
    %9 = arith.mulf %8, %3 : vector<1x2x128xf32>
    %10 = arith.addf %7, %9 : vector<1x2x128xf32>
    %cst_10 = arith.constant 1.140000e-01 : f32
    %11 = vector.broadcast %cst_10 : f32 to vector<1x2x128xf32>
    %12 = arith.mulf %11, %5 : vector<1x2x128xf32>
    %13 = arith.addf %10, %12 : vector<1x2x128xf32>
    %c0_11 = arith.constant 0 : index
    %c0_12 = arith.constant 0 : index
    %c0_13 = arith.constant 0 : index
    %c0_14 = arith.constant 0 : index
    %14 = vector.load %arg3[%c0_11, %c0_12, %c0_13, %c0_14] : memref<1x3x2x128xf32, #tpu.memory_space<vmem>>, vector<1x1x2x128xf32>
    %15 = vector.shape_cast %14 : vector<1x1x2x128xf32> to vector<1x2x128xf32>
    %16 = vector.shape_cast %13 : vector<1x2x128xf32> to vector<1x1x2x128xf32>
    tpu.vector_store %arg3[%c0_11, %c0_12, %c0_13, %c0_14], %16 {strides = array<i32>} : memref<1x3x2x128xf32, #tpu.memory_space<vmem>>, vector<1x1x2x128xf32>,
    %cst_15 = arith.constant -1.690000e-01 : f32
    %17 = vector.broadcast %cst_15 : f32 to vector<1x2x128xf32>
    %18 = arith.mulf %17, %1 : vector<1x2x128xf32>
    %cst_16 = arith.constant 3.310000e-01 : f32
    %19 = vector.broadcast %cst_16 : f32 to vector<1x2x128xf32>
    %20 = arith.mulf %19, %3 : vector<1x2x128xf32>
    %21 = arith.subf %18, %20 : vector<1x2x128xf32>
    %cst_17 = arith.constant 5.000000e-01 : f32
    %22 = vector.broadcast %cst_17 : f32 to vector<1x2x128xf32>
    %23 = arith.mulf %22, %5 : vector<1x2x128xf32>
    %24 = arith.addf %21, %23 : vector<1x2x128xf32>
    %cst_18 = arith.constant 5.000000e-01 : f32
    %25 = vector.broadcast %cst_18 : f32 to vector<1x2x128xf32>
    %26 = arith.addf %24, %25 : vector<1x2x128xf32>
    %c0_19 = arith.constant 0 : index
    %c1_20 = arith.constant 1 : index
    %c0_21 = arith.constant 0 : index
    %c0_22 = arith.constant 0 : index
    %27 = vector.load %arg3[%c0_19, %c1_20, %c0_21, %c0_22] : memref<1x3x2x128xf32, #tpu.memory_space<vmem>>, vector<1x1x2x128xf32>
    %28 = vector.shape_cast %27 : vector<1x1x2x128xf32> to vector<1x2x128xf32>
    %29 = vector.shape_cast %26 : vector<1x2x128xf32> to vector<1x1x2x128xf32>
    tpu.vector_store %arg3[%c0_19, %c1_20, %c0_21, %c0_22], %29 {strides = array<i32>} : memref<1x3x2x128xf32, #tpu.memory_space<vmem>>, vector<1x1x2x128xf32>,
    %cst_23 = arith.constant 5.000000e-01 : f32
    %30 = vector.broadcast %cst_23 : f32 to vector<1x2x128xf32>
    %31 = arith.mulf %30, %1 : vector<1x2x128xf32>
    %cst_24 = arith.constant 4.190000e-01 : f32
    %32 = vector.broadcast %cst_24 : f32 to vector<1x2x128xf32>
    %33 = arith.mulf %32, %3 : vector<1x2x128xf32>
    %34 = arith.subf %31, %33 : vector<1x2x128xf32>
    %cst_25 = arith.constant 8.100000e-02 : f32
    %35 = vector.broadcast %cst_25 : f32 to vector<1x2x128xf32>
    %36 = arith.mulf %35, %5 : vector<1x2x128xf32>
    %37 = arith.subf %34, %36 : vector<1x2x128xf32>
    %cst_26 = arith.constant 5.000000e-01 : f32
    %38 = vector.broadcast %cst_26 : f32 to vector<1x2x128xf32>
    %39 = arith.addf %37, %38 : vector<1x2x128xf32>
    %c0_27 = arith.constant 0 : index
    %c2_28 = arith.constant 2 : index
    %c0_29 = arith.constant 0 : index
    %c0_30 = arith.constant 0 : index
    %40 = vector.load %arg3[%c0_27, %c2_28, %c0_29, %c0_30] : memref<1x3x2x128xf32, #tpu.memory_space<vmem>>, vector<1x1x2x128xf32>
    %41 = vector.shape_cast %40 : vector<1x1x2x128xf32> to vector<1x2x128xf32>
    %42 = vector.shape_cast %39 : vector<1x2x128xf32> to vector<1x1x2x128xf32>
    tpu.vector_store %arg3[%c0_27, %c2_28, %c0_29, %c0_30], %42 {strides = array<i32>} : memref<1x3x2x128xf32, #tpu.memory_space<vmem>>, vector<1x1x2x128xf32>,
    return
  }
  func.func @transform_0(%arg0: i32, %arg1: i32) -> (i32, i32, i32, i32) {
    %c0_i32 = arith.constant 0 : i32
    %c0_i32_0 = arith.constant 0 : i32
    %c0_i32_1 = arith.constant 0 : i32
    return %arg0, %c0_i32, %arg1, %c0_i32_0 : i32, i32, i32, i32
  }
  func.func @transform_1(%arg0: i32, %arg1: i32) -> (i32, i32, i32, i32) {
    %c0_i32 = arith.constant 0 : i32
    %c0_i32_0 = arith.constant 0 : i32
    %c0_i32_1 = arith.constant 0 : i32
    return %arg0, %c0_i32, %arg1, %c0_i32_0 : i32, i32, i32, i32
  }
}

</mosaic_0001>

<bundles_post_ra>
// kernel: tpu_custom_call.1
= control target key start
LH: loop header
LB: loop body
LE: loop exit
PB: predicated region body
PF: predicated region fallthrough
CT: control target
= control target key end

     0   :  { %6 = vsyncpa [#allocation3], 0  ;;  %s667_s0 = inlined_call_operand.hbm [shape: f32[2,3,2,128], index: 0, kind: input, shape index: {}]   ;;  %s668_s1 = inlined_call_operand.hbm [shape: f32[2,3,2,128], index: 1, kind: output, shape index: {}]  }
   0x1   :  { %8 = vsyncpa [#allocation3 + $0x1], 0 }
   0x2   :  { %9 = vsyncpa [#allocation4], 0 }
   0x3   :  { %11 = vsyncpa [#allocation4 + $0x1], 0  ;;  %s492_s6 = smov 0   ;;  %s494_s7 = smov 0  }
   0x4   :  { %s496_s8 = smov 0   ;;  %s498_s9 = smov 0  }
   0x5   :  { %s500_s10 = smov 0   ;;  %s502_s11 = smov 0  }
   0x6 LB: > { %s279_s12 = sadd.s32 4294967295, %s474_s11   ;;  %s280_s13 = sadd.s32 4294967294, %s474_s11   ;;  %s474_s11 = sphi %s502_s11, %s17_s11   ;;  %s470_s10 = sphi %s500_s10, %s683_s10   ;;  %s466_s9 = sphi %s498_s9, %s682_s9   ;;  %s462_s8 = sphi %s496_s8, %s681_s8   ;;  %s458_s7 = sphi %s494_s7, %s680_s7   ;;  %s454_s6 = sphi %s492_s6, %s679_s6  }
   0x7   : > { %s29_s14 = sadd.s32 1, %s470_s10  ;;  %s38_s15 = sadd.s32 1, %s462_s8 }
   0x8   : > { %p31_p0 = scmp.ge.s32.totalorder %s29_s14, 2  ;;  %p45_p1 = scmp.ne.s32.totalorder %s462_s8, %s458_s7 }
   0x9   : > { %p46_p2 = scmp.eq.s32.totalorder %s474_s11, 0  ;;  %p51_p3 = scmp.ne.s32.totalorder %s458_s7, %s454_s6 }
   0xa   : > { %s685_s14 = smov (%p31_p0, %s29_s14), 0  ;;  %p52_p5 = scmp.eq.s32.totalorder %s279_s12, 0 }
   0xb   : > { %p533_p4 = por %p46_p2, %p45_p1  ;;  %s33_s17 = ssub.s32 %s470_s10, %s685_s14 }
   0xc   : > { %p77_p6 = scmp.eq.s32.totalorder %s279_s12, 1  ;;  %p36_p7 = scmp.eq.s32.totalorder %s33_s17, 0 }
   0xd   : > { %p539_p8 = por %p52_p5, %p51_p3  ;;  %p83_p10 = scmp.eq.s32.totalorder %s280_s13, 1 }
   0xe   : > { %p543_p9 = por %p77_p6, %p45_p1  ;;  %p308_p13 = scmp.lt.s32.totalorder %s474_s11, 2 }
   0xf   : > { %s548_s20 = scalar_select %p36_p7, %s462_s8, %s38_s15  }
  0x10   : > { %s672_s19 = scalar_select %p543_p9, 1, 0 }
  0x11   : > { %p550_p11 = por %p83_p10, %p51_p3  ;;  %s103_s22 = sand.u32 1, %s462_s8  }
  0x12   : > { %s292_s23 = smul.u32 6, %s103_s22  ;;  %p560_p0 = pnand %p308_p13, %p533_p4 }
  0x13   : > { %s673_s21 = scalar_select %p550_p11, 1, 0 }
  0x14   : > { %s293_s24 = smul.u32 96, %s470_s10  ;;  %s107_s29 = scalar_lea.vmem [#allocation2], %s292_s23 }
  0x15   : > { %s115_s30 = sshll.u32 %s107_s29, 4  ;;  %s572_s2 = scalar_lea.sflag [#allocation3], %s103_s22  ;;  %s569_s30 = int_to_ptr.vmem [resolvable:$true] %s115_s30 }
  0x16   : > { %s567_s28 = scalar_lea.hbm %s667_s0, %s293_s24  ;;  %p364_p3 = pneg %p560_p0 }
  0x17   : > { %s362_s3 = scalar_lea.hbm %s567_s28, 96  ;;  %s367_s12 = scalar_lea.hbm %s667_s0, 192 }
  0x18   : > { %p363_p2 = scmp.ne.s32.totalorder %s567_s28, %s362_s3  ;;  %p368_p6 = scmp.lt.u32.totalorder %s567_s28, %s667_s0 }
  0x19   : > { %p369_p7 = scmp.lt.u32.totalorder %s367_s12, %s362_s3  ;;  %p371_p13 = scmp.lt.u32.totalorder %s362_s3, %s567_s28 }
  0x1a   : > { %p365_p4 = pnand %p364_p3, %p363_p2 }
  0x1b   : > { %p370_p10 = por %p369_p7, %p368_p6 }
  0x1c   : > { %p366_p5 = pneg %p365_p4 }
  0x1d   : > { %p372_p12 = por %p371_p13, %p370_p10 }
  0x1f   : > { %p373_p1 = pnand %p372_p12, %p366_p5 }
  0x21   : > { %376 = shalt.err (!%p373_p1)
}
  0x22   : > { %s377_s16 = scalar_lea.vmem %s569_s30, 96  ;;  %s476_s17 = smov [#allocation2]  }
  0x23   : > { %p378_p2 = scmp.ne.s32.totalorder %s569_s30, %s377_s16  ;;  %s382_s22 = sshll.u32 %s476_s17, 4  ;;  %s383_s22 = int_to_ptr.vmem [resolvable:$false] %s382_s22 }
  0x24   : > { %s384_s23 = scalar_lea.vmem %s383_s22, 192  ;;  %p385_p9 = scmp.lt.s32.totalorder %s569_s30, %s383_s22 }
  0x25   : > { %p380_p4 = pnand %p378_p2, %p364_p3  ;;  %p386_p6 = scmp.lt.s32.totalorder %s384_s23, %s377_s16 }
  0x27   : > { %p381_p11 = pneg %p380_p4  ;;  %p387_p7 = por %p386_p6, %p385_p9 }
  0x29   : > { %p388_p10 = pnand %p387_p7, %p381_p11 }
  0x2b   : > { %391 = shalt.err (!%p388_p10)
}
  0x2c   : > { %s477_s24 = smov 32   ;;  %s478_s26 = smov 2  }
  0x2d   : > { %303 = dma.hbm_to_vmem [thread:$0]  (!%p560_p0), %s567_s28, 96, %s569_s30, %s572_s2, %s477_s24, %s477_s24, %s478_s26  }
  0x2e   : > { %p123_p12 = scmp.lt.s32.totalorder %s474_s11, 3  ;;  %p675_p1 = scmp.ge.s32.totalorder %s474_s11, 1 }
  0x30   : > { %p124_p3 = pnand %p675_p1, %p123_p12 }
  0x31   : > { %s604_s27 = sand.u32 (!%p124_p3), 1, %s458_s7  }
  0x32   : > { %127 = sbr.rel (%p124_p3) target bundleno = 87 (0x57), region = 24  ;;  %s130_s3 = scalar_lea.sflag (!%p124_p3), [#allocation3], %s604_s27 }
  0x33   : > { %s294_s29 = smul.u32 (!%p124_p3), 6, %s604_s27 }
  0x35   : > { %s133_s4 = scalar_lea.vmem (!%p124_p3), [#allocation2], %s294_s29 }
  0x39   : > { %445 = dma.done.wait (%p539_p8), %s130_s3, 96  }
  0x3a   : > { %447 = vsyncadd (%p539_p8), %s130_s3, 4294967200  ;;  %v152_v0 = vld [vmem:[%s133_s4] sm:$0x3]  ;;  %v285_v1 = vld [vmem:[%s133_s4 + $0x2] sm:$0x3]  ;;  %s151_s25 = scalar_lea.vmem [#allocation5], %s294_s29 }
  0x3b   : > { %v286_v2 = vld [vmem:[%s133_s4 + $0x4] sm:$0x3]  ;;  %v157_v3 = vmul.f32 0.299, %v152_v0  ;;  %v158_v4 = vmul.f32 0.587, %v285_v1 }
  0x3c   : > { %v160_v5 = vmul.f32 0.114, %v286_v2  ;;  %v163_v6 = vmul.f32 -0.169, %v152_v0  ;;  %v164_v7 = vmul.f32 0.331, %v285_v1 }
  0x3d   : > { %v166_v8 = vmul.f32 0.5, %v286_v2  ;;  %v171_v9 = vmul.f32 0.5, %v152_v0  ;;  %v159_v10 = vadd.f32 %v158_v4, %v157_v3  ;;  %v172_v11 = vmul.f32 0.419, %v285_v1  ;;  %s194_s18 = sshll.u32 %s151_s25, 4  ;;  %s295_s28 = smul.u32 96, %s466_s9  ;;  %s613_s18 = int_to_ptr.vmem [resolvable:$true] %s194_s18 }
  0x3e   : > { %v174_v12 = vmul.f32 0.081, %v286_v2  ;;  %v165_v13 = vsub.f32 %v163_v6, %v164_v7  ;;  %s180_s12 = scalar_lea.sflag [#allocation4], %s604_s27  ;;  %s392_s13 = scalar_lea.vmem %s613_s18, 96 }
  0x3f   : > { %v161_v14 = vadd.f32 %v160_v5, %v159_v10  ;;  %v173_v15 = vsub.f32 %v171_v9, %v172_v11  ;;  %s618_s5 = scalar_lea.hbm %s668_s1, %s295_s28  ;;  %p393_p8 = scmp.ne.s32.totalorder %s613_s18, %s392_s13 }
  0x40   : > { %v167_v16 = vadd.f32 %v166_v8, %v165_v13  ;;  %p676_p9 = scmp.ne.s32.totalorder %s672_s19, 0  ;;  %s479_s9 = smov [#allocation5]  }
  0x41   : > { %162 = vst [vmem:[%s151_s25] sm:$0x3] %v161_v14  ;;  %v175_v17 = vsub.f32 %v173_v15, %v174_v12  ;;  %s396_s15 = sshll.u32 %s479_s9, 4  ;;  %s397_s15 = int_to_ptr.vmem [resolvable:$false] %s396_s15 }
  0x42   : > { %v168_v18 = vadd.f32 0.5, %v167_v16  ;;  %p394_p11 = pnand %p393_p8, %p676_p9  ;;  %s398_s16 = scalar_lea.vmem %s397_s15, 192 }
  0x43   : > { %v176_v19 = vadd.f32 0.5, %v175_v17  ;;  %p399_p5 = scmp.lt.s32.totalorder %s613_s18, %s397_s15  ;;  %p400_p13 = scmp.lt.s32.totalorder %s398_s16, %s392_s13 }
  0x44   : > { %287 = vst [vmem:[%s151_s25 + $0x2] sm:$0x3] %v168_v18  ;;  %p395_p0 = pneg %p394_p11 }
  0x45   : > { %288 = vst [vmem:[%s151_s25 + $0x4] sm:$0x3] %v176_v19  ;;  %p401_p2 = por %p400_p13, %p399_p5 }
  0x47   : > { %p402_p4 = pnand %p401_p2, %p395_p0 }
  0x49   : > { %405 = shalt.err (!%p402_p4)
}
  0x4a   : > { %s406_s17 = scalar_lea.hbm %s618_s5, 96  ;;  %s410_s24 = scalar_lea.hbm %s668_s1, 192 }
  0x4b   : > { %p407_p6 = scmp.ne.s32.totalorder %s618_s5, %s406_s17  ;;  %p411_p12 = scmp.lt.u32.totalorder %s618_s5, %s668_s1 }
  0x4c   : > { %p412_p1 = scmp.lt.u32.totalorder %s410_s24, %s406_s17  ;;  %p414_p8 = scmp.lt.u32.totalorder %s406_s17, %s618_s5 }
  0x4d   : > { %p408_p7 = pnand %p407_p6, %p676_p9 }
  0x4e   : > { %p413_p3 = por %p412_p1, %p411_p12 }
  0x4f   : > { %p409_p10 = pneg %p408_p7 }
  0x50   : > { %p415_p11 = por %p414_p8, %p413_p3 }
  0x52   : > { %p416_p0 = pnand %p415_p11, %p409_p10 }
  0x54   : > { %419 = shalt.err (!%p416_p0)
}
  0x55   : > { %s480_s3 = smov 32   ;;  %s481_s4 = smov 2  }
  0x56   : > { %298 = dma.vmem_to_hbm [thread:$0]  (%p676_p9), %s613_s18, 96, %s618_s5, %s180_s12, %s480_s3, %s480_s3, %s481_s4  }
  0x57 PF: > { %s209_s25 = sand.u32 1, %s454_s6   ;;  %p677_p5 = scmp.ne.s32.totalorder %s673_s21, 0 }
  0x58   : > { %p678_p13 = scmp.ge.s32.totalorder %s474_s11, 2  ;;  %s210_s28 = scalar_lea.sflag [#allocation4], %s209_s25 }
  0x5a   : > { %p305_p2 = pnand %p678_p13, %p677_p5 }
  0x5c   : > { %449 = dma.done.wait (!%p305_p2), %s210_s28, 96  }
  0x5d   : > { %451 = vsyncadd (!%p305_p2), %s210_s28, 4294967200  ;;  %s17_s11 = sadd.s32 1, %s474_s11   ;;  %s679_s6 = smov %s458_s7 }
  0x5e   : > { %p14_p4 = scmp.ge.s32.totalorder %s17_s11, 4   ;;  %s680_s7 = smov %s462_s8 }
  0x5f   : > { %s681_s8 = smov %s548_s20  ;;  %s682_s9 = smov %s470_s10 }
  0x60   : > { %s683_s10 = smov %s685_s14  ;;  %16 = sbr.rel (!%p14_p4) target bundleno = 6 (0x6), region = 73 }
  0x67   :  { %215 = vsyncpa [#allocation3], 1 }
  0x68   :  { %217 = vsyncpa [#allocation3 + $0x1], 1 }
  0x69   :  { %218 = vsyncpa [#allocation4], 1 }
  0x6a   :  { %220 = vsyncpa [#allocation4 + $0x1], 1 }

</bundles_post_ra>
